<compile_context>
chip_gen: v7x
topology: tpu7x:2x2x1
jax: 0.10.0
libtpu: 0.0.40
codegen_flags: <defaults>
</compile_context>

<pallas_src>
import functools

import jax
import jax.numpy as jnp
import numpy as np
from jax import lax
from jax.experimental import pallas as pl
from jax.experimental.pallas import tpu as pltpu


def _round_up(v, mult):
    return (v + mult - 1) // mult * mult


# ------------------------------- Pallas kernel --------------------------------

def _decoder_block_kernel(x_ref, w1_ref, b1_ref, mask_ref, mph_ref, cb_ref,
                          o_ref, ybuf_ref, *, lead, tl, w_pad):
    """One (batch, lane-tile) step of conv1 -> ConvTranspose2d(3,2) -> conv2.

    x:[1, m, tl] bf16   w1:[c, m] bf16   b1:[c, 1] f32   mask:[1, tl] f32
    mph:[4n, 4c] bf16   cb:[4n, 1] f32   ->   o:[1, 4n, tl] f32
    ybuf:[c, lead + tl] bf16 scratch carries the `lead` lanes of y preceding
    the current tile (zeros at t == 0), so the one-column / one-row /
    row+column shifts of the transposed conv never read outside the tile.
    """
    t = pl.program_id(1)

    # ---- carry shuffle: lanes of y preceding this tile -----------------------
    @pl.when(t == 0)
    def _():
        ybuf_ref[:, :lead] = jnp.zeros((ybuf_ref.shape[0], lead), ybuf_ref.dtype)

    @pl.when(t > 0)
    def _():
        ybuf_ref[:, :lead] = ybuf_ref[:, tl:tl + lead]

    # ---- conv1 (1x1): y = W1 @ x + b1, forced to zero on spatial-pad lanes ---
    y = jnp.dot(w1_ref[...], x_ref[0], preferred_element_type=jnp.float32)
    y = (y + b1_ref[...]) * mask_ref[...]
    ybuf_ref[:, lead:] = y.astype(ybuf_ref.dtype)

    # ---- ConvTranspose2d(3, s=2) + conv2 (1x1), merged into ONE matmul -------
    # RHS stacks y and its {1 col, 1 row, 1 row + 1 col} shifted copies along
    # the contraction dim (zero boundaries come from the spatial pad row/col
    # and the carry zeros), so there is a single MXU drain per tile.
    rhs = jnp.concatenate(
        [ybuf_ref[:, lead:lead + tl],
         ybuf_ref[:, lead - 1:lead - 1 + tl],
         ybuf_ref[:, lead - w_pad:lead - w_pad + tl],
         ybuf_ref[:, lead - w_pad - 1:lead - w_pad - 1 + tl]],
        axis=0)
    out = jnp.dot(mph_ref[...], rhs, preferred_element_type=jnp.float32)
    o_ref[0] = out + cb_ref[...]                                     # [4n, tl]


# --------------------------------- wrapper -------------------------------------

def decoder_block_forward(x_nchw, w1, b1, w2, b2, w3, b3, *, tile_lanes=None):
    """Exact DecoderBlock.forward semantics (NCHW in / NCHW out, float32)."""
    f32, bf16 = jnp.float32, jnp.bfloat16
    B, m, H, W = x_nchw.shape
    assert m % 4 == 0
    c = m // 4
    n = w3.shape[0]
    Hp, Wp = H + 1, W + 1                     # spatial grid padded by 1 row/col
    L = Hp * Wp                               # flattened padded spatial (lanes)
    OH, OW = 2 * H + 1, 2 * W + 1             # ConvTranspose2d(k=3,s=2,p=0) size

    # Sublane/lane friendly padded sizes.
    m_pad = _round_up(m, 16)
    c_pad = _round_up(c, 16)                  # bf16 packs 16 sublanes / vreg
    n_pad = _round_up(n, 4)                   # -> 4*n_pad multiple of 16
    lead = _round_up(Wp + 1, 128)             # carry halo, lane aligned
    if tile_lanes is None:
        tile_lanes = 256 if L <= 1024 else 1024
    tl = max(_round_up(tile_lanes, 128), lead)
    L_pad = _round_up(L, tl)
    T = L_pad // tl

    # ---- input: channel-major, spatial grid padded to Hp x Wp, flattened,
    # lane dim padded to L_pad, cast to bf16 (MXU-native operand).
    # TODO(synk): this jnp.pad is one extra HBM pass over x; moving the row
    # re-stride into the kernel conflicts with keeping both input and output
    # lane tiles 128-dense, so it stays in the wrapper for now.
    x_sp = jnp.pad(x_nchw.astype(f32), ((0, 0), (0, m_pad - m), (0, 1), (0, 1)))
    x_in = jnp.pad(x_sp.reshape(B, m_pad, L),
                   ((0, 0), (0, 0), (0, L_pad - L))).astype(bf16)

    # ---- parameter prep (tiny, one-time XLA work) ----
    w1_mat = jnp.zeros((c_pad, m_pad), f32).at[:c, :m].set(
        w1.reshape(c, m).astype(f32)).astype(bf16)                   # [c_pad, m_pad]
    b1_col = jnp.zeros((c_pad, 1), f32).at[:c, 0].set(b1.astype(f32))
    w3_mat = w3.reshape(n, c).astype(f32)                            # [n, c]

    def tap(kh, kw):                    # conv2 folded into each transposed-conv tap
        return w3_mat @ w2[:, :, kh, kw].astype(f32).T               # [n, c]

    zer = jnp.zeros((n, c), f32)
    # Row blocks = output parity phases [even/even | even/odd | odd/even | odd/odd]
    # Column blocks = shift {none, 1 col, 1 row, 1 row + 1 col} (contraction dim).
    blocks = [
        [tap(0, 0), tap(0, 1), tap(1, 0), tap(1, 1)],
        [tap(0, 2), zer,       tap(1, 2), zer],
        [tap(2, 0), tap(2, 1), zer,       zer],
        [tap(2, 2), zer,       zer,       zer],
    ]
    mph = jnp.zeros((4 * n_pad, 4 * c_pad), f32)
    for j, col in enumerate(blocks):
        for p, t_pc in enumerate(col):
            mph = mph.at[p * n_pad:p * n_pad + n,
                         j * c_pad:j * c_pad + c].set(t_pc)
    mph = mph.astype(bf16)                                           # [4n_pad, 4c_pad]
    cb = w3_mat @ b2.astype(f32).reshape(c, 1) + b3.astype(f32).reshape(n, 1)
    cb_all = jnp.tile(jnp.zeros((n_pad, 1), f32).at[:n].set(cb), (4, 1))

    # Valid (non-pad) lanes of the Hp x Wp grid, as a single [1, L_pad] row.
    mask = jnp.pad(jnp.pad(jnp.ones((H, W), f32), ((0, 1), (0, 1))).reshape(1, L),
                   ((0, 0), (0, L_pad - L)))

    # VMEM budget: 3/4 of physical (64 MiB on v7x, 128 MiB on v5e/v6e), capped.
    try:
        phys_vmem = getattr(pltpu.get_tpu_info(), "vmem_capacity_bytes",
                            64 * 1024 * 1024)
    except Exception:  # pragma: no cover - conservative fallback
        phys_vmem = 64 * 1024 * 1024
    vmem_limit = int(min(96 * 1024 * 1024,
                         max(32 * 1024 * 1024, phys_vmem * 3 // 4)))

    flops = 2 * B * L_pad * (c_pad * m_pad + (4 * n_pad) * (4 * c_pad))
    bytes_accessed = (x_in.size * 2 + B * (4 * n_pad) * L_pad * 4
                      + mask.size * 4 + w1_mat.size * 2 + mph.size * 2)

    kernel = functools.partial(_decoder_block_kernel, lead=lead, tl=tl, w_pad=Wp)
    out = pl.pallas_call(
        kernel,
        out_shape=jax.ShapeDtypeStruct((B, 4 * n_pad, L_pad), jnp.float32),
        grid=(B, T),
        in_specs=[
            pl.BlockSpec((1, m_pad, tl), lambda b, t: (b, 0, t)),
            pl.BlockSpec((c_pad, m_pad), lambda b, t: (0, 0)),
            pl.BlockSpec((c_pad, 1), lambda b, t: (0, 0)),
            pl.BlockSpec((1, tl), lambda b, t: (0, t)),
            pl.BlockSpec((4 * n_pad, 4 * c_pad), lambda b, t: (0, 0)),
            pl.BlockSpec((4 * n_pad, 1), lambda b, t: (0, 0)),
        ],
        out_specs=pl.BlockSpec((1, 4 * n_pad, tl), lambda b, t: (b, 0, t)),
        scratch_shapes=[pltpu.VMEM((c_pad, lead + tl), jnp.bfloat16)],
        compiler_params=pltpu.CompilerParams(
            dimension_semantics=("parallel", "arbitrary"),
            vmem_limit_bytes=vmem_limit),
        cost_estimate=pl.CostEstimate(flops=flops, transcendentals=0,
                                      bytes_accessed=bytes_accessed),
    )(x_in, w1_mat, b1_col, mask, mph, cb_all)

    # ---- interleave the 4 parity phases into the (OH, OW) grid ----
    # TODO(synk): the stride-2 pixel interleave of the final output is still an
    # XLA reshape/transpose (one extra pass over the output); doing it in-kernel
    # needs lane-level interleave plus row-aligned tiles and was not adopted.
    out = out[:, :, :L].reshape(B, 4, n_pad, Hp, Wp)[:, :, :n]
    out = out.reshape(B, 2, 2, n, Hp, Wp)            # [B, row-par, col-par, n, r, s]
    out = jnp.transpose(out, (0, 3, 4, 1, 5, 2))     # [B, n, r, row-par, s, col-par]
    out = out.reshape(B, n, 2 * Hp, 2 * Wp)[:, :, :OH, :OW]
    return out


# ----------------------------- pure-JAX reference -----------------------------

def decoder_block_reference(x_nchw, w1, b1, w2, b2, w3, b3):
    dn = ("NCHW", "OIHW", "NCHW")
    y = lax.conv_general_dilated(x_nchw, w1, (1, 1), "VALID",
                                 dimension_numbers=dn) + b1[None, :, None, None]
    # ConvTranspose2d(k=3, s=2, p=0) == cross-corr with flipped kernel on the
    # lhs-dilated (x2) input padded by k-1.
    t = lax.conv_general_dilated(y, jnp.flip(w2, (2, 3)).transpose(1, 0, 2, 3),
                                 window_strides=(1, 1), padding=((2, 2), (2, 2)),
                                 lhs_dilation=(2, 2),
                                 dimension_numbers=dn) + b2[None, :, None, None]
    out = lax.conv_general_dilated(t, w3, (1, 1), "VALID",
                                   dimension_numbers=dn) + b3[None, :, None, None]
    return out


# --------------------------------- main ---------------------------------------

if __name__ == "__main__":
    B, m, n, H, W = 2, 16, 8, 16, 16     # m divisible by 4 (module assumes m/4)
    c = m // 4

    key = jax.random.PRNGKey(0)
    kx, k1, k2, k3, k4, k5, k6 = jax.random.split(key, 7)

    x = jax.random.normal(kx, (B, m, H, W), jnp.float32)
    # Deterministic synthetic parameters (PyTorch layout conventions):
    w1 = jax.random.normal(k1, (c, m, 1, 1), jnp.float32) * 0.2   # Conv2d(m, c, 1)
    b1 = jax.random.normal(k2, (c,), jnp.float32) * 0.1
    w2 = jax.random.normal(k3, (c, c, 3, 3), jnp.float32) * 0.2   # ConvTranspose2d(c, c, 3, 2)
    b2 = jax.random.normal(k4, (c,), jnp.float32) * 0.1
    w3 = jax.random.normal(k5, (n, c, 1, 1), jnp.float32) * 0.2   # Conv2d(c, n, 1)
    b3 = jax.random.normal(k6, (n,), jnp.float32) * 0.1

    out = jax.jit(decoder_block_forward)(x, w1, b1, w2, b2, w3, b3)
    out = jax.block_until_ready(out)

    ref = decoder_block_reference(x, w1, b1, w2, b2, w3, b3)
    assert out.shape == (B, n, 2 * H + 1, 2 * W + 1), out.shape
    # bf16 MXU operands with f32 accumulation -> looser tolerance than pure f32.
    np.testing.assert_allclose(np.asarray(out), np.asarray(ref),
                               rtol=5e-2, atol=5e-2)

    print("KERNEL_OK")
</pallas_src>

<mosaic_0001>
module attributes {stable_mosaic.version = 11 : i64} {
  func.func @_decoder_block_kernel(%arg0: i32, %arg1: i32, %arg2: memref<1x16x256xbf16, #tpu.memory_space<vmem>>, %arg3: memref<16x16xbf16, #tpu.memory_space<vmem>>, %arg4: memref<16x1xf32, #tpu.memory_space<vmem>>, %arg5: memref<1x256xf32, #tpu.memory_space<vmem>>, %arg6: memref<32x64xbf16, #tpu.memory_space<vmem>>, %arg7: memref<32x1xf32, #tpu.memory_space<vmem>>, %arg8: memref<1x32x256xf32, #tpu.memory_space<vmem>>, %arg9: memref<16x384xbf16, #tpu.memory_space<vmem>>) attributes {dimension_semantics = [#tpu.dimension_semantics<parallel>, #tpu.dimension_semantics<arbitrary>], iteration_bounds = array<i64: 2, 2>, scalar_prefetch = 0 : i64, scratch_operands = 1 : i64, tpu.core_type = #tpu.core_type<tc>, window_params = [{transform_indices = @transform_0, window_bounds = array<i64: 1, 16, 256>}, {pipeline_mode = #tpu.pipeline_mode<synchronous>, transform_indices = @transform_1, window_bounds = array<i64: 16, 16>}, {pipeline_mode = #tpu.pipeline_mode<synchronous>, transform_indices = @transform_2, window_bounds = array<i64: 16, 1>}, {transform_indices = @transform_3, window_bounds = array<i64: 1, 256>}, {pipeline_mode = #tpu.pipeline_mode<synchronous>, transform_indices = @transform_4, window_bounds = array<i64: 32, 64>}, {pipeline_mode = #tpu.pipeline_mode<synchronous>, transform_indices = @transform_5, window_bounds = array<i64: 32, 1>}, {transform_indices = @transform_6, window_bounds = array<i64: 1, 32, 256>}]} {
    %c0_i32 = arith.constant 0 : i32
    %0 = arith.cmpi eq, %arg1, %c0_i32 : i32
    %1 = arith.extui %0 : i1 to i32
    %c0_i32_0 = arith.constant 0 : i32
    %2 = arith.cmpi ne, %1, %c0_i32_0 : i32
    scf.if %2 {
      %cst_25 = arith.constant 0.000000e+00 : bf16
      %31 = vector.broadcast %cst_25 : bf16 to vector<16x128xbf16>
      %c0_26 = arith.constant 0 : index
      %c0_27 = arith.constant 0 : index
      %32 = vector.load %arg9[%c0_26, %c0_27] : memref<16x384xbf16, #tpu.memory_space<vmem>>, vector<16x128xbf16>
      tpu.vector_store %arg9[%c0_26, %c0_27], %31 {strides = array<i32>} : memref<16x384xbf16, #tpu.memory_space<vmem>>, vector<16x128xbf16>,
    } else {
    }
    %c0_i32_1 = arith.constant 0 : i32
    %3 = arith.cmpi sgt, %arg1, %c0_i32_1 : i32
    %4 = arith.extui %3 : i1 to i32
    %c0_i32_2 = arith.constant 0 : i32
    %5 = arith.cmpi ne, %4, %c0_i32_2 : i32
    scf.if %5 {
      %c0_25 = arith.constant 0 : index
      %c256 = arith.constant 256 : index
      %31 = vector.load %arg9[%c0_25, %c256] : memref<16x384xbf16, #tpu.memory_space<vmem>>, vector<16x128xbf16>
      %c0_26 = arith.constant 0 : index
      %c0_27 = arith.constant 0 : index
      %32 = vector.load %arg9[%c0_26, %c0_27] : memref<16x384xbf16, #tpu.memory_space<vmem>>, vector<16x128xbf16>
      tpu.vector_store %arg9[%c0_26, %c0_27], %31 {strides = array<i32>} : memref<16x384xbf16, #tpu.memory_space<vmem>>, vector<16x128xbf16>,
    } else {
    }
    %c0 = arith.constant 0 : index
    %c0_3 = arith.constant 0 : index
    %6 = vector.load %arg3[%c0, %c0_3] : memref<16x16xbf16, #tpu.memory_space<vmem>>, vector<16x16xbf16>
    %c0_4 = arith.constant 0 : index
    %c0_5 = arith.constant 0 : index
    %c0_6 = arith.constant 0 : index
    %7 = vector.load %arg2[%c0_4, %c0_5, %c0_6] : memref<1x16x256xbf16, #tpu.memory_space<vmem>>, vector<1x16x256xbf16>
    %8 = vector.shape_cast %7 : vector<1x16x256xbf16> to vector<16x256xbf16>
    %cst = arith.constant dense<0.000000e+00> : vector<16x256xf32>
    %9 = tpu.matmul %6, %8, %cst {dimension_numbers = #tpu.dot_dimension_numbers<[1], [0], [0], [1], [0, 0, 1, 1], [], []>} : vector<16x16xbf16>, vector<16x256xbf16>, vector<16x256xf32> -> vector<16x256xf32>
    %c0_7 = arith.constant 0 : index
    %c0_8 = arith.constant 0 : index
    %10 = vector.load %arg4[%c0_7, %c0_8] : memref<16x1xf32, #tpu.memory_space<vmem>>, vector<16x1xf32>
    %11 = vector.broadcast %10 : vector<16x1xf32> to vector<16x256xf32>
    %12 = arith.addf %9, %11 : vector<16x256xf32>
    %c0_9 = arith.constant 0 : index
    %c0_10 = arith.constant 0 : index
    %13 = vector.load %arg5[%c0_9, %c0_10] : memref<1x256xf32, #tpu.memory_space<vmem>>, vector<1x256xf32>
    %14 = vector.broadcast %13 : vector<1x256xf32> to vector<16x256xf32>
    %15 = arith.mulf %12, %14 : vector<16x256xf32>
    %16 = arith.truncf %15 : vector<16x256xf32> to vector<16x256xbf16>
    %c0_11 = arith.constant 0 : index
    %c128 = arith.constant 128 : index
    %17 = vector.load %arg9[%c0_11, %c128] : memref<16x384xbf16, #tpu.memory_space<vmem>>, vector<16x256xbf16>
    tpu.vector_store %arg9[%c0_11, %c128], %16 {strides = array<i32>} : memref<16x384xbf16, #tpu.memory_space<vmem>>, vector<16x256xbf16>,
    %c0_12 = arith.constant 0 : index
    %c128_13 = arith.constant 128 : index
    %18 = vector.load %arg9[%c0_12, %c128_13] : memref<16x384xbf16, #tpu.memory_space<vmem>>, vector<16x256xbf16>
    %c0_14 = arith.constant 0 : index
    %c127 = arith.constant 127 : index
    %19 = vector.load %arg9[%c0_14, %c127] : memref<16x384xbf16, #tpu.memory_space<vmem>>, vector<16x256xbf16>
    %c0_15 = arith.constant 0 : index
    %c111 = arith.constant 111 : index
    %20 = vector.load %arg9[%c0_15, %c111] : memref<16x384xbf16, #tpu.memory_space<vmem>>, vector<16x256xbf16>
    %c0_16 = arith.constant 0 : index
    %c110 = arith.constant 110 : index
    %21 = vector.load %arg9[%c0_16, %c110] : memref<16x384xbf16, #tpu.memory_space<vmem>>, vector<16x256xbf16>
    %22 = tpu.concatenate %18, %19, %20, %21 in 0 : vector<16x256xbf16>, vector<16x256xbf16>, vector<16x256xbf16>, vector<16x256xbf16> -> vector<64x256xbf16>
    %c0_17 = arith.constant 0 : index
    %c0_18 = arith.constant 0 : index
    %23 = vector.load %arg6[%c0_17, %c0_18] : memref<32x64xbf16, #tpu.memory_space<vmem>>, vector<32x64xbf16>
    %cst_19 = arith.constant dense<0.000000e+00> : vector<32x256xf32>
    %24 = tpu.matmul %23, %22, %cst_19 {dimension_numbers = #tpu.dot_dimension_numbers<[1], [0], [0], [1], [0, 0, 1, 1], [], []>} : vector<32x64xbf16>, vector<64x256xbf16>, vector<32x256xf32> -> vector<32x256xf32>
    %c0_20 = arith.constant 0 : index
    %c0_21 = arith.constant 0 : index
    %25 = vector.load %arg7[%c0_20, %c0_21] : memref<32x1xf32, #tpu.memory_space<vmem>>, vector<32x1xf32>
    %26 = vector.broadcast %25 : vector<32x1xf32> to vector<32x256xf32>
    %27 = arith.addf %24, %26 : vector<32x256xf32>
    %c0_22 = arith.constant 0 : index
    %c0_23 = arith.constant 0 : index
    %c0_24 = arith.constant 0 : index
    %28 = vector.load %arg8[%c0_22, %c0_23, %c0_24] : memref<1x32x256xf32, #tpu.memory_space<vmem>>, vector<1x32x256xf32>
    %29 = vector.shape_cast %28 : vector<1x32x256xf32> to vector<32x256xf32>
    %30 = vector.shape_cast %27 : vector<32x256xf32> to vector<1x32x256xf32>
    tpu.vector_store %arg8[%c0_22, %c0_23, %c0_24], %30 {strides = array<i32>} : memref<1x32x256xf32, #tpu.memory_space<vmem>>, vector<1x32x256xf32>,
    return
  }
  func.func @transform_0(%arg0: i32, %arg1: i32) -> (i32, i32, i32) {
    %c0_i32 = arith.constant 0 : i32
    %c0_i32_0 = arith.constant 0 : i32
    return %arg0, %c0_i32, %arg1 : i32, i32, i32
  }
  func.func @transform_1(%arg0: i32, %arg1: i32) -> (i32, i32) {
    %c0_i32 = arith.constant 0 : i32
    %c0_i32_0 = arith.constant 0 : i32
    %c0_i32_1 = arith.constant 0 : i32
    return %c0_i32, %c0_i32_0 : i32, i32
  }
  func.func @transform_2(%arg0: i32, %arg1: i32) -> (i32, i32) {
    %c0_i32 = arith.constant 0 : i32
    %c0_i32_0 = arith.constant 0 : i32
    %c0_i32_1 = arith.constant 0 : i32
    return %c0_i32, %c0_i32_0 : i32, i32
  }
  func.func @transform_3(%arg0: i32, %arg1: i32) -> (i32, i32) {
    %c0_i32 = arith.constant 0 : i32
    %c0_i32_0 = arith.constant 0 : i32
    return %c0_i32, %arg1 : i32, i32
  }
  func.func @transform_4(%arg0: i32, %arg1: i32) -> (i32, i32) {
    %c0_i32 = arith.constant 0 : i32
    %c0_i32_0 = arith.constant 0 : i32
    %c0_i32_1 = arith.constant 0 : i32
    return %c0_i32, %c0_i32_0 : i32, i32
  }
  func.func @transform_5(%arg0: i32, %arg1: i32) -> (i32, i32) {
    %c0_i32 = arith.constant 0 : i32
    %c0_i32_0 = arith.constant 0 : i32
    %c0_i32_1 = arith.constant 0 : i32
    return %c0_i32, %c0_i32_0 : i32, i32
  }
  func.func @transform_6(%arg0: i32, %arg1: i32) -> (i32, i32, i32) {
    %c0_i32 = arith.constant 0 : i32
    %c0_i32_0 = arith.constant 0 : i32
    return %arg0, %c0_i32, %arg1 : i32, i32, i32
  }
}

</mosaic_0001>

<bundles_post_ra>
// kernel: decoder_block_forward.1
= control target key start
LH: loop header
LB: loop body
LE: loop exit
PB: predicated region body
PF: predicated region fallthrough
CT: control target
= control target key end

     0   :  { %s906_s21 = smov 0   ;;  %s908_s22 = smov 0   ;;  %s1068_s0 = inlined_call_operand.vmem [shape: bf16[2,16,512], index: 0, kind: input, shape index: {}]   ;;  %s1069_s1 = inlined_call_operand.vmem [shape: bf16[16,16], index: 1, kind: input, shape index: {}]   ;;  %s1070_s2 = inlined_call_operand.vmem [shape: f32[16,1], index: 2, kind: input, shape index: {}]   ;;  %s1071_s3 = inlined_call_operand.vmem [shape: f32[1,512], index: 3, kind: input, shape index: {}]   ;;  %s1072_s4 = inlined_call_operand.vmem [shape: bf16[32,64], index: 4, kind: input, shape index: {}]   ;;  %s1073_s5 = inlined_call_operand.vmem [shape: f32[32,1], index: 5, kind: input, shape index: {}]   ;;  %s1074_s6 = inlined_call_operand.vmem [shape: f32[2,32,512], index: 6, kind: output, shape index: {}]  }
   0x1   :  { %s910_s23 = smov 0   ;;  %s912_s24 = smov 0  }
   0x2   :  { %s914_s25 = smov 0   ;;  %s916_s26 = smov 0  }
   0x3   :  { %s918_s27 = smov 0  }
   0x4 LB: > { %s25_s28 = sadd.s32 1, %s856_s25  ;;  %s28_s29 = sadd.s32 1, %s860_s26  ;;  %s864_s27 = sphi %s918_s27, %s16_s27   ;;  %s860_s26 = sphi %s916_s26, %s1081_s26   ;;  %s856_s25 = sphi %s914_s25, %s1080_s25   ;;  %s852_s24 = sphi %s912_s24, %s1079_s24   ;;  %s848_s23 = sphi %s910_s23, %s1078_s23   ;;  %s844_s22 = sphi %s908_s22, %s1077_s22   ;;  %s840_s21 = sphi %s906_s21, %s1076_s21  }
   0x5   : > { %p26_p0 = scmp.ge.s32.totalorder %s25_s28, 2  ;;  %s705_s30 = sadd.s32 4294967295, %s864_s27  }
   0x6   : > { %p44_p1 = scmp.ne.s32.totalorder %s844_s22, %s840_s21  ;;  %p45_p2 = scmp.eq.s32.totalorder %s864_s27, 0 }
   0x7   : > { %s1083_s28 = smov (%p26_p0, %s25_s28), 0  ;;  %s1085_s29 = smov (!%p26_p0, %s28_s29), %s860_s26 }
   0x8   : > { %p30_p3 = scmp.ge.s32.totalorder %s1085_s29, 2  ;;  %p186_p4 = scmp.eq.s32.totalorder %s705_s30, 3 }
   0x9   : > { %s33_s7 = ssub.s32 %s856_s25, %s1083_s28  ;;  %p46_p5 = por %p45_p2, %p44_p1 }
   0xa   : > { %s1087_s29 = smov (%p30_p3, %s1085_s29), 0  ;;  %p954_p6 = por %p186_p4, %p44_p1 }
   0xb   : > { %s32_s9 = ssub.s32 %s860_s26, %s1087_s29  ;;  %s37_s11 = sadd.s32 1, %s844_s22 }
   0xc   : > { %s34_s10 = sor.u32 %s33_s7, %s32_s9  ;;  %p708_p8 = scmp.ge.s32.totalorder %s864_s27, 4 }
   0xd   : > { %p35_p7 = scmp.eq.s32.totalorder %s34_s10, 0 }
   0xe   : > { %220 = sbr.rel (%p708_p8) target bundleno = 29 (0x1d), region = 32 }
   0xf   : > { %s962_s12 = scalar_select %p35_p7, %s844_s22, %s37_s11  }
  0x15   : > { %223 = sbr.rel (!%p46_p5) target bundleno = 29 (0x1d), region = 36  ;;  %s225_s13 = sand.u32 (%p46_p5), 1, %s844_s22  }
  0x16   : > { %s710_s14 = sshll.u32 (%p46_p5), %s856_s25, 1  ;;  %s709_s15 = sshll.u32 (%p46_p5), %s225_s13, 4 }
  0x17   : > { %s711_s16 = sshll.u32 (%p46_p5), %s860_s26, 3  ;;  %s227_s7 = scalar_lea.vmem (%p46_p5), [#allocation3], %s709_s15 }
  0x18   : > { %s230_s17 = sadd.s32 (%p46_p5), %s711_s16, %s710_s14 }
  0x19   : > { %s712_s18 = sshll.u32 (%p46_p5), %s230_s17, 2 }
  0x1a   : > { %s232_s30 = scalar_lea.vmem (%p46_p5), %s1068_s0, %s712_s18 }
  0x1b   : > { %v262_v0 = vld [vmem:[%s232_s30] sm:$0xff] (%p46_p5)  ;;  %v264_v1 = vld [vmem:[%s232_s30 + $0x10] sm:$0xff] (%p46_p5) }
  0x1c   : > { %263 = vst [vmem:[%s227_s7] sm:$0xff] %v262_v0  ;;  %265 = vst [vmem:[%s227_s7 + $0x8] sm:$0xff] %v264_v1 }
  0x1d PF: > { %p713_p9 = scmp.ge.s32.totalorder %s864_s27, 1  ;;  %p278_p10 = scmp.lt.s32.totalorder %s864_s27, 5 }
  0x1f   : > { %p279_p11 = pnand %p713_p9, %p278_p10 }
  0x20   : > { %s285_s9 = sand.u32 (!%p279_p11), 1, %s840_s21   ;;  %s975_s10 = sshll.u32 (!%p279_p11), %s848_s23, 1 }
  0x21   : > { %282 = sbr.rel (%p279_p11) target bundleno = 646 (0x286), region = 78  ;;  %s714_s11 = sshll.u32 (!%p279_p11), %s285_s9, 4 }
  0x22   : > { %s715_s13 = sshll.u32 (!%p279_p11), %s285_s9, 6  ;;  %p319_p12 = scmp.lt.s32.totalorder (!%p279_p11), %s975_s10, 3 }
  0x23   : > { %s287_s18 = scalar_lea.vmem (!%p279_p11), [#allocation3], %s714_s11  ;;  %s985_s19 = scalar_lea.vmem (!%p279_p11), [#allocation4], %s715_s13 }
  0x24   : > { %p717_p13 = scmp.ne.s32.totalorder (!%p279_p11), %s848_s23, 0 }
  0x28   : > { %s979_s14 = scalar_select %p319_p12, %s975_s10, 3 }
  0x29   : > { %328 = sbr.rel (%p717_p13) target bundleno = 48 (0x30), region = 86  ;;  %v866_v2 = vmov (!%p717_p13), 0  }
  0x2a   : > { %s321_s17 = scalar_lea.vmem %s1071_s3, %s979_s14  ;;  %329 = vst [vmem:[#allocation2] sm:$0xff] (!%p717_p13), %v866_v2 }
  0x30 PF: > { %p718_p0 = scmp.le.s32.totalorder %s848_s23, 0 }
  0x31   : > { %v334_v3 = vld [vmem:[#allocation2 + $0x10] sm:$0xff] (!%p718_p0) }
  0x32   : > { %333 = sbr.rel (%p718_p0) target bundleno = 57 (0x39), region = 90  ;;  %335 = vst [vmem:[#allocation2] sm:$0xff] (!%p718_p0), %v334_v3 }
  0x39 PF: > { %v804_v4 = vld [vmem:[%s287_s18 + $0x4] ss:$8 sps:$4 sm:$0xff]   ;;  %v806_v5 = vld [vmem:[%s287_s18] ss:$8 sps:$4 sm:$0xff]   ;;  %v867_v6 = vmov 0   ;;  %vm367_vm0 = vcmask 130048   ;;  %v416_v11 = vlaneseq }
  0x3a   : > { %403 = vmatprep.mubr.bf16.mxu0 %v867_v6  ;;  %802 = vset.pattern.permute.xlu0 %v867_v6  ;;  %v807_v7 = vld [vmem:[%s1069_s1] sm:$0xff]   ;;  %v341_v9 = vld [vmem:[%s1070_s2 + $0x8] sm:$0xff]  ;;  %s868_s11 = smov 1   ;;  %s869_s14 = smov 17   ;;  %v480_v35 = vld [vmem:[%s1073_s5 + $0x18] sm:$0xff]  ;;  %vm446_vm1 = vcmask 7168  }
  0x3b   : > { %371 = vmatprep.subr.bf16.mxu0 %v804_v4  ;;  %v340_v8 = vld [vmem:[%s1070_s2] sm:$0xff]  ;;  %560 = vmatprep.mubr.bf16.mxu1 %v867_v6  ;;  %v417_v12 = vshrl.u32 %v416_v11, 7  ;;  %s870_s16 = smov 18   ;;  %v478_v34 = vld [vmem:[%s1073_s5 + $0x8] sm:$0xff]  ;;  %v479_v37 = vld [vmem:[%s1073_s5 + $0x10] sm:$0xff]  ;;  %vm457_vm2 = vcmask 138240  }
  0x3c   : > { %372 = vmatpush1.bf16.msra.mxu0 %v806_v5  ;;  %344 = vperm.xlu0 %802, %v340_v8   ;;  %v436_v10 = vld [vmem:[#allocation2] sm:$0xff]  ;;  %vm468_vm3 = vcmask 146432   ;;  %v809_v54 = vld [vmem:[%s1072_s4 + $0x8] sm:$0xff]   ;;  %vm511_vm4 = vcmask 523264  }
  0x3d   : > { %803 = vset.pattern.permute.xlu1 %v867_v6  ;;  %v418_v14 = vsub.s32 0, %v417_v12  ;;  %v414_v15 = vld [vmem:[%s321_s17] sm:$0x3]  ;;  %v422_v16 = vsub.s32 1, %v417_v12 }
  0x3e   : > { %v477_v36 = vld [vmem:[%s1073_s5] sm:$0xff] }
  0x3f   : > { %722 = vmatmul.mubr.msk.bf16.vlgmr.msra.gmra.mrb[0].mxu0 %vm367_vm0, %v807_v7  ;;  %v419_v19 = vrot.slane %v414_v15, %v418_v14  ;;  %v423_v23 = vrot.slane %v414_v15, %v422_v16  ;;  %v808_v53 = vld [vmem:[%s1072_s4] sm:$0xff]  }
  0x40   : > { %349 = vperm.xlu0 %802, %v341_v9   ;;  %550 = vmatprep.mubr.bf16.mxu0 %v867_v6 }
  0x44   : > { %440 = vrot.lane.b32.xlu0 %v436_v10, %s868_s11 }
  0xbb   : > { %v345_v13 = vpop.permute.xlu0 %344 }
  0xbf   : > { %v350_v21 = vpop.permute.xlu0 %349 }
  0xc3   : > { %v441_v38 = vpop.permute.xlu0 %440 }
 0x112   : > { %v405_v17 = vpop.f32.mrb[0].mxu0 }
 0x113   : > { %v406_v18 = vadd.f32 %v405_v17, %v345_v13  ;;  %v407_v20 = vpop.f32.mrb[1].mxu0 }
 0x114   : > { %v408_v22 = vadd.f32 %v407_v20, %v345_v13  ;;  %v409_v24 = vpop.f32.mrb[2].mxu0 }
 0x115   : > { %v410_v25 = vadd.f32 %v409_v24, %v350_v21  ;;  %v411_v26 = vpop.f32.mrb[3].mxu0  ;;  %v426_v28 = vmul.f32 %v419_v19, %v406_v18 }
 0x116   : > { %v412_v27 = vadd.f32 %v411_v26, %v350_v21  ;;  %v427_v30 = vmul.f32 %v423_v23, %v408_v22 }
 0x117   : > { %v428_v29 = vmul.f32 %v419_v19, %v410_v25 }
 0x118   : > { %v429_v31 = vmul.f32 %v423_v23, %v412_v27 }
 0x119   : > { %v430_v32 = vpack.c.bf16 %v428_v29, %v426_v28 }
 0x11a   : > { %v431_v33 = vpack.c.bf16 %v429_v31, %v427_v30 }
 0x11b   : > { %442 = vrot.lane.b32.xlu1 %v430_v32, %s868_s11 }
 0x11c   : > { %433 = vst [vmem:[#allocation2 + $0x10] sm:$0xff] %v431_v33  ;;  %455 = vrot.lane.b32.xlu0 %v431_v33, %s869_s14  ;;  %518 = vmatprep.subr.bf16.mxu0 %v431_v33 }
 0x11d   : > { %733 = vmatprep.subr.bf16.mxu1 %v431_v33  ;;  %519 = vmatpush1.bf16.msra.mxu0 %v430_v32 }
 0x11e   : > { %737 = vmatpush1.bf16.msra.mxu1 %v430_v32 }
 0x11f   : > { %453 = vrot.lane.b32.xlu1 %v430_v32, %s869_s14 }
 0x120   : > { %464 = vrot.lane.b32.xlu0 %v430_v32, %s870_s16 }
 0x123   : > { %444 = vrot.lane.b32.xlu1 %v431_v33, %s868_s11 }
 0x124   : > { %462 = vrot.lane.b32.xlu0 %v436_v10, %s870_s16 }
 0x127   : > { %451 = vrot.lane.b32.xlu1 %v436_v10, %s869_s14 }
 0x128   : > { %488 = vperm.xlu0 %802, %v478_v34  }
 0x12b   : > { %466 = vrot.lane.b32.xlu1 %v431_v33, %s870_s16  ;;  %s729_s16 = sshll.u32 (%p954_p6), %s852_s24, 4 }
 0x12c   : > { %498 = vperm.xlu0 %802, %v480_v35   ;;  %s588_s17 = sadd.s32 (%p954_p6), %s729_s16, %s975_s10 }
 0x12d   : > { %s730_s8 = sshll.u32 (%p954_p6), %s588_s17, 3 }
 0x12e   : > { %s590_s20 = scalar_lea.vmem (%p954_p6), %s1074_s6, %s730_s8 }
 0x12f   : > { %483 = vperm.xlu1 %803, %v477_v36  }
 0x133   : > { %493 = vperm.xlu1 %803, %v479_v37  }
 0x18d   : > { %v443_v39 = vpop.permute.xlu1 %442 }
 0x18e   : > { %v456_v40 = vpop.permute.xlu0 %455  ;;  %v447_v45 = vsel %vm446_vm1, %v441_v38, %v443_v39 }
 0x191   : > { %v454_v41 = vpop.permute.xlu1 %453 }
 0x192   : > { %v465_v43 = vpop.permute.xlu0 %464  ;;  %v459_v46 = vsel %vm457_vm2, %v454_v41, %v456_v40 }
 0x195   : > { %v445_v42 = vpop.permute.xlu1 %444 }
 0x196   : > { %v448_v44 = vsel %vm446_vm1, %v443_v39, %v445_v42  ;;  %v463_v49 = vpop.permute.xlu0 %462 }
 0x197   : > { %520 = vmatprep.subr.bf16.mxu0 %v448_v44  ;;  %734 = vmatprep.subr.bf16.mxu1 %v448_v44  ;;  %v469_v52 = vsel %vm468_vm3, %v463_v49, %v465_v43 }
 0x198   : > { %521 = vmatpush1.bf16.msra.mxu0 %v447_v45  ;;  %738 = vmatpush1.bf16.msra.mxu1 %v447_v45 }
 0x199   : > { %v452_v47 = vpop.permute.xlu1 %451  ;;  %522 = vmatprep.subr.bf16.mxu0 %v459_v46  ;;  %735 = vmatprep.subr.bf16.mxu1 %v459_v46 }
 0x19a   : > { %v458_v48 = vsel %vm457_vm2, %v452_v47, %v454_v41 }
 0x19c   : > { %523 = vmatpush1.bf16.msra.mxu0 %v458_v48  ;;  %739 = vmatpush1.bf16.msra.mxu1 %v458_v48 }
 0x19d   : > { %v467_v50 = vpop.permute.xlu1 %466 }
 0x19e   : > { %v470_v51 = vsel %vm468_vm3, %v465_v43, %v467_v50 }
 0x19f   : > { %524 = vmatprep.subr.bf16.mxu0 %v470_v51  ;;  %736 = vmatprep.subr.bf16.mxu1 %v470_v51 }
 0x1a0   : > { %525 = vmatpush1.bf16.msra.mxu0 %v469_v52  ;;  %740 = vmatpush1.bf16.msra.mxu1 %v469_v52 }
 0x1a3   : > { %725 = vmatmul.mubr.msk.bf16.vlgmr.msra.gmra.mrb[4].mxu0 %vm511_vm4, %v808_v53  ;;  %726 = vmatmul.mubr.msk.bf16.vlgmr.msra.gmra.mrb[0].mxu1 %vm511_vm4, %v809_v54 }
 0x1a7   : > { %v489_v56 = vpop.permute.xlu0 %488 }
 0x1ab   : > { %v499_v58 = vpop.permute.xlu0 %498 }
 0x1ae   : > { %v484_v55 = vpop.permute.xlu1 %483 }
 0x1b2   : > { %v494_v57 = vpop.permute.xlu1 %493 }
 0x276   : > { %v552_v59 = vpop.f32.mrb[4].mxu0  ;;  %v562_v60 = vpop.f32.mrb[0].mxu1  ;;  %585 = sbr.rel (!%p954_p6) target bundleno = 646 (0x286), region = 94 }
 0x277   : > { %v553_v61 = vadd.f32 %v552_v59, %v484_v55  ;;  %v563_v62 = vadd.f32 %v562_v60, %v494_v57  ;;  %v554_v63 = vpop.f32.mrb[5].mxu0  ;;  %v564_v0 = vpop.f32.mrb[1].mxu1 }
 0x278   : > { %v555_v1 = vadd.f32 %v554_v63, %v484_v55  ;;  %v565_v2 = vadd.f32 %v564_v0, %v494_v57  ;;  %v556_v3 = vpop.f32.mrb[6].mxu0  ;;  %v566_v4 = vpop.f32.mrb[2].mxu1 }
 0x279   : > { %571 = vst [vmem:[%s985_s19] sm:$0xff] %v553_v61  ;;  %575 = vst [vmem:[%s985_s19 + $0x20] sm:$0xff] %v563_v62  ;;  %v557_v5 = vadd.f32 %v556_v3, %v489_v56  ;;  %v567_v6 = vadd.f32 %v566_v4, %v499_v58  ;;  %v558_v7 = vpop.f32.mrb[7].mxu0  ;;  %v568_v8 = vpop.f32.mrb[3].mxu1 }
 0x27a   : > { %572 = vst [vmem:[%s985_s19 + $0x8] sm:$0xff] %v555_v1  ;;  %576 = vst [vmem:[%s985_s19 + $0x28] sm:$0xff] %v565_v2  ;;  %v559_v9 = vadd.f32 %v558_v7, %v489_v56  ;;  %v569_v10 = vadd.f32 %v568_v8, %v499_v58 }
 0x27b   : > { %573 = vst [vmem:[%s985_s19 + $0x10] sm:$0xff] %v557_v5  ;;  %577 = vst [vmem:[%s985_s19 + $0x30] sm:$0xff] %v567_v6 }
 0x27c   : > { %574 = vst [vmem:[%s985_s19 + $0x18] sm:$0xff] %v559_v9  ;;  %578 = vst [vmem:[%s985_s19 + $0x38] sm:$0xff] %v569_v10 }
 0x280   : > { %v603_v11 = vld [vmem:[%s985_s19] sm:$0xff] }
 0x281   : > { %v605_v12 = vld [vmem:[%s985_s19 + $0x8] sm:$0xff]  ;;  %v611_v15 = vld [vmem:[%s985_s19 + $0x20] sm:$0xff]  ;;  %604 = vst [vmem:[%s590_s20] sm:$0xff] %v603_v11 }
 0x282   : > { %v607_v13 = vld [vmem:[%s985_s19 + $0x10] sm:$0xff]  ;;  %v613_v16 = vld [vmem:[%s985_s19 + $0x28] sm:$0xff]  ;;  %606 = vst [vmem:[%s590_s20 + $0x8] sm:$0xff] %v605_v12  ;;  %612 = vst [vmem:[%s590_s20 + $0x40] sm:$0xff] %v611_v15 }
 0x283   : > { %v609_v14 = vld [vmem:[%s985_s19 + $0x18] sm:$0xff]  ;;  %v615_v17 = vld [vmem:[%s985_s19 + $0x30] sm:$0xff]  ;;  %608 = vst [vmem:[%s590_s20 + $0x20] sm:$0xff] %v607_v13  ;;  %614 = vst [vmem:[%s590_s20 + $0x48] sm:$0xff] %v613_v16 }
 0x284   : > { %v617_v18 = vld [vmem:[%s985_s19 + $0x38] sm:$0xff]  ;;  %610 = vst [vmem:[%s590_s20 + $0x28] sm:$0xff] %v609_v14  ;;  %616 = vst [vmem:[%s590_s20 + $0x60] sm:$0xff] %v615_v17 }
 0x285   : > { %618 = vst [vmem:[%s590_s20 + $0x68] sm:$0xff] %v617_v18 }
 0x286 PF: > { %s16_s27 = sadd.s32 1, %s864_s27   ;;  %s1076_s21 = smov %s844_s22 }
 0x287   : > { %p13_p1 = scmp.ge.s32.totalorder %s16_s27, 6   ;;  %s1077_s22 = smov %s962_s12 }
 0x288   : > { %s1078_s23 = smov %s856_s25  ;;  %s1079_s24 = smov %s860_s26 }
 0x289   : > { %s1080_s25 = smov %s1083_s28  ;;  %s1081_s26 = smov %s1087_s29 }
 0x28a   :  { %15 = sbr.rel (!%p13_p1) target bundleno = 4 (0x4), region = 151 }

</bundles_post_ra>
